<compile_context>
chip_gen: v6e
topology: v6e:2x2x1
jax: 0.10.0
libtpu: 0.0.40
codegen_flags: <defaults>
</compile_context>

<pallas_src>
import functools
import math

import jax
import jax.numpy as jnp
import jax.scipy as jsp
from jax.experimental import pallas as pl
from jax.experimental.pallas import tpu as pltpu


# ----------------------------------------------------------------------------
# helpers
# ----------------------------------------------------------------------------
def _round_up(x, m):
    return ((x + m - 1) // m) * m


def _choose_tm(m):
    """Row-tile size: big tiles, prefer >=2 M-blocks (v7x megacore), avoid row pad."""
    for tm in (512, 256, 128, 64):
        if m % tm == 0 and m // tm >= 2:
            return tm
    for tm in (512, 256, 128, 64, 32, 16):
        if m % tm == 0:
            return tm
    # fallback: pad rows up to a multiple of a 16-aligned tile
    return min(512, max(16, _round_up(_round_up(m, 2) // 2, 16)))


def _pad_rows(x, tm):
    p = (-x.shape[0]) % tm
    if p:
        x = jnp.pad(x, ((0, p), (0, 0)))
    return x


# ----------------------------------------------------------------------------
# Pallas kernel 1: fused matmul + bias   (rows tiled, K and N full-extent)
# ----------------------------------------------------------------------------
def _matmul_bias_kernel(a_ref, b_ref, bias_ref, o_ref):
    a = a_ref[...].astype(jnp.float32)          # bf16 or f32 in HBM, f32 in-register
    acc = jnp.dot(a, b_ref[...], preferred_element_type=jnp.float32) + bias_ref[...]
    o_ref[...] = acc.astype(o_ref.dtype)


@functools.partial(jax.jit, static_argnames=("tm", "out_dtype"))
def _matmul_call(a, b, bias, *, tm, out_dtype):
    m, k = a.shape
    _, n = b.shape
    return pl.pallas_call(
        _matmul_bias_kernel,
        out_shape=jax.ShapeDtypeStruct((m, n), out_dtype),
        grid=(m // tm,),
        in_specs=[
            pl.BlockSpec((tm, k), lambda i: (i, 0)),   # K is full-extent: no K pad
            pl.BlockSpec((k, n), lambda i: (0, 0)),    # whole (small) weight matrix
            pl.BlockSpec((1, n), lambda i: (0, 0)),
        ],
        out_specs=pl.BlockSpec((tm, n), lambda i: (i, 0)),
        compiler_params=pltpu.CompilerParams(dimension_semantics=("parallel",)),
    )(a, b, bias)


def pmatmul(a, b, bias=None, out_dtype=jnp.float32):
    """(M,K) @ (K,N) + bias via the Pallas kernel.  Only M may get zero-padded."""
    a = jnp.asarray(a)
    b = jnp.asarray(b, jnp.float32)
    m, _ = a.shape
    _, n = b.shape
    if bias is None:
        bias = jnp.zeros((1, n), jnp.float32)
    else:
        bias = jnp.asarray(bias, jnp.float32).reshape(1, n)
    tm = _choose_tm(m)
    out = _matmul_call(_pad_rows(a, tm), b, bias, tm=tm, out_dtype=out_dtype)
    return out if out.shape[0] == m else out[:m]


def feat_matmul(x, w, bias=None, out_dtype=jnp.float32):
    """Apply a (C_in, C_out) matrix (+bias) to the last dim of an ND feature tensor."""
    lead = x.shape[:-1]
    y = pmatmul(x.reshape(-1, x.shape[-1]), w, bias=bias, out_dtype=out_dtype)
    return y.reshape(*lead, y.shape[-1])


# ----------------------------------------------------------------------------
# Pallas kernel 2: fused per-slab sum + Gram (X^T X)  ->  mean / covariance
# ----------------------------------------------------------------------------
def _stats_kernel(a_ref, gram_ref, sum_ref):
    @pl.when(pl.program_id(0) == 0)
    def _():
        gram_ref[...] = jnp.zeros_like(gram_ref)
        sum_ref[...] = jnp.zeros_like(sum_ref)

    a = a_ref[...].astype(jnp.float32)
    gram_ref[...] += jax.lax.dot_general(
        a, a, (((0,), (0,)), ((), ())), preferred_element_type=jnp.float32)
    sum_ref[...] += jnp.sum(a, axis=0, keepdims=True)


@functools.partial(jax.jit, static_argnames=("tm",))
def _stats_call(a, *, tm):
    m, c = a.shape
    return pl.pallas_call(
        _stats_kernel,
        out_shape=(jax.ShapeDtypeStruct((c, c), jnp.float32),
                   jax.ShapeDtypeStruct((1, c), jnp.float32)),
        grid=(m // tm,),
        in_specs=[pl.BlockSpec((tm, c), lambda i: (i, 0))],
        out_specs=(pl.BlockSpec((c, c), lambda i: (0, 0)),
                   pl.BlockSpec((1, c), lambda i: (0, 0))),
        compiler_params=pltpu.CompilerParams(dimension_semantics=("arbitrary",)),
    )(a)


def slab_stats(feat):
    """Per-channel mean (C,) and covariance (C,C) of an (..., C) tensor, one HBM pass."""
    x = feat.reshape(-1, feat.shape[-1])
    n, _ = x.shape
    tm = _choose_tm(n)
    gram, s = _stats_call(_pad_rows(x, tm), tm=tm)   # zero rows add nothing
    mean = s[0] / n
    cov = gram / n - jnp.outer(mean, mean)
    return mean, cov


# ----------------------------------------------------------------------------
# layout helpers / resizing (glue)
# ----------------------------------------------------------------------------
def to_nhwc(x):
    return jnp.transpose(x, (0, 2, 3, 1))


def to_nchw(x):
    return jnp.transpose(x, (0, 3, 1, 2))


def resize(x, size):
    n, c, _, _ = x.shape
    return jax.image.resize(x, (n, c, size[0], size[1]), method="bilinear")


def get_size(size, scale, h, w, oversize=False):
    target = size * scale
    factor = target / (min(h, w) if oversize else max(h, w))
    nh = max(16, int(round(h * factor / 16)) * 16)
    nw = max(16, int(round(w * factor / 16)) * 16)
    return (nh, nw)


def get_iters_and_sizes(size, iters, passes, use_multires):
    if use_multires and passes > 1:
        sizes = [size * 2 ** (-(passes - 1 - p)) for p in range(passes)]
        sizes = [max(16, int(round(s / 16)) * 16) for s in sizes]
    else:
        sizes = [size] * passes
    per = max(1, iters // (passes * 5))
    iters_per_pass_and_layer = [[per] * 5 for _ in range(passes)]
    return iters_per_pass_and_layer, sizes


# ----------------------------------------------------------------------------
# synthetic encoders / decoders (VGG stand-ins): patch-embed + linear (Pallas)
# ----------------------------------------------------------------------------
CHANNELS = {5: 32, 4: 32, 3: 16, 2: 16, 1: 8}
FACTORS = {5: 4, 4: 4, 3: 2, 2: 2, 1: 1}


class Encoder:
    def __init__(self, level, key):
        f, c = FACTORS[level], CHANNELS[level]
        kw, kb = jax.random.split(key)
        self.f, self.c = f, c
        self.W = jax.random.normal(kw, (3 * f * f, c), jnp.float32) / math.sqrt(3 * f * f)
        self.b = 0.1 * jax.random.normal(kb, (c,), jnp.float32)

    def __call__(self, x_nchw):
        n, c, h, w = x_nchw.shape
        f = self.f
        x = x_nchw.reshape(n, c, h // f, f, w // f, f)
        x = jnp.transpose(x, (0, 2, 4, 1, 3, 5)).reshape(n, h // f, w // f, c * f * f)
        y = feat_matmul(x, self.W, bias=self.b)      # fused matmul + bias (Pallas)
        return jax.nn.relu(y)                        # NHWC features


class Decoder:
    def __init__(self, level, key):
        f, c = FACTORS[level], CHANNELS[level]
        self.f = f
        self.W = jax.random.normal(key, (c, 3 * f * f), jnp.float32) / math.sqrt(c)

    def __call__(self, feat_nhwc):
        n, hf, wf, _ = feat_nhwc.shape
        f = self.f
        y = feat_matmul(feat_nhwc, self.W).reshape(n, hf, wf, 3, f, f)
        y = jnp.transpose(y, (0, 3, 1, 4, 2, 5)).reshape(n, 3, hf * f, wf * f)
        return y                                     # NCHW image


# ----------------------------------------------------------------------------
# algorithmic pieces (fit_pca, hist_match, random_rotation, optimal_transport)
# ----------------------------------------------------------------------------
def fit_pca(tensor):
    A = tensor.reshape(-1, tensor.shape[-1]) - jnp.mean(tensor)   # scalar mean (as in ref)
    _, eigvals, vt = jnp.linalg.svd(A, full_matrices=False)       # A = U S V^T
    eigvecs = vt.T
    ratios = jnp.cumsum(eigvals / jnp.sum(eigvals))
    # data-dependent k (reference semantics) -> one small host sync per (pass, layer),
    # outside the hot OT loop.
    k = int(jnp.argmax(ratios > 0.9))
    # TODO(synk): guard k>=1 for tiny synthetic shapes (reference can yield k=0)
    k = max(k, 1)
    eigvecs = eigvecs[:, :k]
    features = feat_matmul(tensor, eigvecs)
    return features, eigvecs


def _matching_matrix(cov_t, cov_s, mode, eps=1e-2):
    c = cov_t.shape[0]
    eye = jnp.eye(c, dtype=jnp.float32)
    if mode == "chol":
        chol_t = jnp.linalg.cholesky(cov_t + eps * eye)
        chol_s = jnp.linalg.cholesky(cov_s + eps * eye)
        # W = L_t^{-T} L_s^T  so that  W^T cov_t W = cov_s  (fixed transpose)
        return jsp.linalg.solve_triangular(chol_t, chol_s.T, trans=1, lower=True)
    # TODO(synk): 'cdf' / 'pca' / 'sym' histogram modes (sorting / eig) not implemented
    raise NotImplementedError(f"hist_mode={mode}")


def hist_match(target, source, mode="chol", eps=1e-2):
    c = target.shape[-1]
    mu_t, cov_t = slab_stats(target)
    mu_s, cov_s = slab_stats(source)
    W = _matching_matrix(cov_t, cov_s, mode, eps)
    bias = mu_s - mu_t @ W                       # (x - mu_t) @ W + mu_s, fused
    matched = pmatmul(target.reshape(-1, c), W, bias=bias, out_dtype=target.dtype)
    return matched.reshape(target.shape)


_ROT_KEY = [jax.random.PRNGKey(1234)]


def _next_rot_key():
    _ROT_KEY[0], k = jax.random.split(_ROT_KEY[0])
    return k


def _rotation_matrix(N, key):
    if N == 1:
        return jnp.eye(1, dtype=jnp.float32)
    H = jnp.eye(N, dtype=jnp.float32)
    D = []
    for n in range(N - 1):
        key, sub = jax.random.split(key)
        x = jax.random.normal(sub, (N - n,), jnp.float32)
        norm2 = x @ x
        x0 = x[0]
        Dn = jnp.sign(jnp.sign(x[0]) + 0.5)
        x = x.at[0].add(Dn * jnp.sqrt(norm2))
        x = x / jnp.sqrt((norm2 - x0 ** 2 + x[0] ** 2) / 2.0)
        H = H.at[:, n:].add(-jnp.outer(H[:, n:] @ x, x))
        D.append(Dn)
    D_last = (-1.0) ** (N - 1) * jnp.prod(jnp.stack(D))
    Dv = jnp.concatenate([jnp.stack(D), D_last[None]])
    return (Dv * H.T).T


_rotation_jit = functools.partial(jax.jit, static_argnums=(0,))(_rotation_matrix)


def random_rotation(N):
    return _rotation_jit(N, _next_rot_key())


@functools.partial(jax.jit, static_argnames=("hist_mode",))
def _ot_step(x_flat, style_mean, style_cov, key, *, hist_mode):
    """One sliced-OT iteration, algebraically fused:
         y = ((x R - mu_t) W + mu_s) R^T  ==  x A + b,  A = R W R^T, b = mu_s - mu_x A
       -> one Pallas stats pass + one Pallas affine pass over the big slab."""
    c = x_flat.shape[-1]
    R = _rotation_matrix(c, key)
    mu_x, cov_x = slab_stats(x_flat)
    cov_t = R.T @ cov_x @ R                      # rotate the tiny CxC stats, not the slab
    cov_s = R.T @ style_cov @ R
    W = _matching_matrix(cov_t, cov_s, hist_mode)
    A = R @ W @ R.T
    b = style_mean - mu_x @ A
    return pmatmul(x_flat, A, bias=b, out_dtype=x_flat.dtype)


def optimal_transport(pastiche_feature, style_feature, hist_mode):
    c = pastiche_feature.shape[-1]
    mu_s, cov_s = slab_stats(style_feature)
    flat = _ot_step(pastiche_feature.reshape(-1, c), mu_s, cov_s,
                    _next_rot_key(), hist_mode=hist_mode)
    return flat.reshape(pastiche_feature.shape)


def mix_style_features(style_features, mixing_mask, mixing_alpha, hist_mode):
    i = mixing_alpha
    out = []
    for sf in style_features:
        h, w = sf.shape[1:3]
        mix = jax.image.resize(mixing_mask, (1, 1, h, w), method="nearest")
        mix = to_nhwc(mix)
        A, B = sf[0:1], sf[1:2]
        AtoB = hist_match(A, B, mode=hist_mode)
        BtoA = hist_match(B, A, mode=hist_mode)
        out.append((A * (1 - i) + AtoB * i) * mix
                   + (BtoA * (1 - i) + B * i) * (1 - mix))
    return out


# ----------------------------------------------------------------------------
# OptimalTexture module (forward pass)
# ----------------------------------------------------------------------------
class OptimalTexture:
    def __init__(self, size=512, iters=500, passes=5, hist_mode="chol",
                 color_transfer=None, content_strength=0.1, style_scale=1,
                 mixing_alpha=0.5, no_pca=False, no_multires=False):
        self.hist_mode = hist_mode
        self.color_transfer = color_transfer
        self.content_strength = content_strength
        self.style_scale = style_scale
        self.mixing_alpha = mixing_alpha
        self.use_pca = not no_pca
        self.passes = passes
        self.iters_per_pass_and_layer, self.sizes = get_iters_and_sizes(
            size, iters, passes, not no_multires)
        wkey = jax.random.PRNGKey(7)
        keys = jax.random.split(wkey, 10)
        levels = list(range(5, 0, -1))
        self.encoders = [Encoder(l, keys[i]) for i, l in enumerate(levels)]
        self.decoders = [Decoder(l, keys[5 + i]) for i, l in enumerate(levels)]

    def encode_inputs(self, pastiche, styles, content, size):
        if pastiche.shape[-2] != size and pastiche.shape[-1] != size:
            style_tens = [resize(s, size=get_size(size, self.style_scale,
                                                  s.shape[2], s.shape[3]))
                          for s in styles]
            if content is not None:
                cont_size = get_size(size, 1.0, content.shape[2],
                                     content.shape[3], oversize=True)
                cont_tens = resize(content, size=cont_size)
            else:
                cont_size = (size, size)
                cont_tens = None
            pastiche = resize(pastiche, size=cont_size)
        else:
            style_tens = styles
            cont_tens = content

        style_features, style_eigvs, content_features = [], [], []
        for l, encoder in enumerate(self.encoders):
            style_features.append(
                jnp.concatenate([encoder(s) for s in style_tens], axis=0))
            if self.use_pca:
                feats, eigvecs = fit_pca(style_features[l])
                style_features[l] = feats
                style_eigvs.append(eigvecs)
            else:
                eigvecs = None
            if cont_tens is not None:
                content_feature = encoder(cont_tens)
                if self.use_pca:
                    content_feature = feat_matmul(content_feature, eigvecs)
                content_feature = (content_feature - jnp.mean(content_feature)
                                   + jnp.mean(style_features[l]))
                content_features.append(content_feature)
        return pastiche, style_features, style_eigvs, content_features

    def forward(self, pastiche, styles, content=None, verbose=False):
        for p in range(self.passes):
            if verbose:
                print(f"Pass {p}, size {self.sizes[p]}")
            pastiche, style_features, style_eigvs, content_features = \
                self.encode_inputs(pastiche, styles, content, self.sizes[p])

            if len(styles) > 1:
                mkey = jax.random.fold_in(jax.random.PRNGKey(42), p)
                mixing_mask = jnp.ceil(
                    jax.random.uniform(mkey, style_features[1].shape[1:3])
                    - self.mixing_alpha)[None, None, ...]
                style_features = mix_style_features(
                    style_features, mixing_mask, self.mixing_alpha, self.hist_mode)

            for l, (encoder, decoder) in enumerate(zip(self.encoders, self.decoders)):
                pastiche_feature = encoder(pastiche)
                if self.use_pca:
                    pastiche_feature = feat_matmul(pastiche_feature, style_eigvs[l])
                feat_shape = pastiche_feature.shape
                c = feat_shape[-1]

                # style stats are constant across the OT iterations: hoist one
                # Pallas stats pass out of the loop (identical semantics).
                mu_s, cov_s = slab_stats(style_features[l])

                # keep the big iterate in bf16 across the hot loop (kernels
                # accumulate in f32); everything else stays f32.
                flat = pastiche_feature.reshape(-1, c).astype(jnp.bfloat16)
                use_content = len(content_features) > 0 and l <= 2
                if use_content:
                    content_flat = content_features[l].reshape(-1, c)
                    strength = self.content_strength / 2 ** (4 - l)

                # [l - 1] indexing matches the reference implementation
                for _ in range(self.iters_per_pass_and_layer[p][l - 1]):
                    flat = _ot_step(flat, mu_s, cov_s, _next_rot_key(),
                                    hist_mode=self.hist_mode)
                    if use_content:
                        flat = (flat + strength * (content_flat - flat)
                                ).astype(jnp.bfloat16)

                pastiche_feature = flat.reshape(feat_shape)
                if self.use_pca:
                    pastiche_feature = feat_matmul(pastiche_feature, style_eigvs[l].T)
                pastiche = decoder(pastiche_feature)

        if self.color_transfer is not None:
            # TODO(synk): rgb_to_hls / hls_to_rgb based color transfer not implemented
            #             (helper source not provided); 'opt'/'lum' paths skipped.
            pass
        return pastiche


# ----------------------------------------------------------------------------
if __name__ == "__main__":
    key = jax.random.PRNGKey(0)
    k1, k2, k3 = jax.random.split(key, 3)
    pastiche = jax.random.normal(k1, (1, 3, 32, 32), jnp.float32)
    style = jax.random.normal(k2, (1, 3, 32, 32), jnp.float32)
    content = jax.random.normal(k3, (1, 3, 32, 32), jnp.float32)

    model = OptimalTexture(size=32, iters=10, passes=2, hist_mode="chol",
                           content_strength=0.1, style_scale=1.0)
    out = model.forward(pastiche, [style], content=content)
    out = jax.block_until_ready(out)

    assert out.shape == (1, 3, 32, 32), out.shape
    assert bool(jnp.all(jnp.isfinite(out)))
    print("KERNEL_OK")
</pallas_src>

<mosaic_0001>
module attributes {stable_mosaic.version = 11 : i64} {
  func.func @_matmul_bias_kernel(%arg0: i32, %arg1: memref<16x48xf32, #tpu.memory_space<vmem>>, %arg2: memref<48x32xf32, #tpu.memory_space<vmem>>, %arg3: memref<1x32xf32, #tpu.memory_space<vmem>>, %arg4: memref<16x32xf32, #tpu.memory_space<vmem>>) attributes {dimension_semantics = [#tpu.dimension_semantics<parallel>], iteration_bounds = array<i64: 1>, scalar_prefetch = 0 : i64, scratch_operands = 0 : i64, tpu.core_type = #tpu.core_type<tc>, window_params = [{transform_indices = @transform_0, window_bounds = array<i64: 16, 48>}, {pipeline_mode = #tpu.pipeline_mode<synchronous>, transform_indices = @transform_1, window_bounds = array<i64: 48, 32>}, {pipeline_mode = #tpu.pipeline_mode<synchronous>, transform_indices = @transform_2, window_bounds = array<i64: 1, 32>}, {transform_indices = @transform_3, window_bounds = array<i64: 16, 32>}]} {
    %c0 = arith.constant 0 : index
    %c0_0 = arith.constant 0 : index
    %0 = vector.load %arg1[%c0, %c0_0] : memref<16x48xf32, #tpu.memory_space<vmem>>, vector<16x48xf32>
    %c0_1 = arith.constant 0 : index
    %c0_2 = arith.constant 0 : index
    %1 = vector.load %arg2[%c0_1, %c0_2] : memref<48x32xf32, #tpu.memory_space<vmem>>, vector<48x32xf32>
    %cst = arith.constant dense<0.000000e+00> : vector<16x32xf32>
    %2 = tpu.matmul %0, %1, %cst {dimension_numbers = #tpu.dot_dimension_numbers<[1], [0], [0], [1], [0, 0, 1, 1], [], []>} : vector<16x48xf32>, vector<48x32xf32>, vector<16x32xf32> -> vector<16x32xf32>
    %c0_3 = arith.constant 0 : index
    %c0_4 = arith.constant 0 : index
    %3 = vector.load %arg3[%c0_3, %c0_4] : memref<1x32xf32, #tpu.memory_space<vmem>>, vector<1x32xf32>
    %4 = vector.broadcast %3 : vector<1x32xf32> to vector<16x32xf32>
    %5 = arith.addf %2, %4 : vector<16x32xf32>
    %c0_5 = arith.constant 0 : index
    %c0_6 = arith.constant 0 : index
    %6 = vector.load %arg4[%c0_5, %c0_6] : memref<16x32xf32, #tpu.memory_space<vmem>>, vector<16x32xf32>
    tpu.vector_store %arg4[%c0_5, %c0_6], %5 {strides = array<i32>} : memref<16x32xf32, #tpu.memory_space<vmem>>, vector<16x32xf32>,
    return
  }
  func.func @transform_0(%arg0: i32) -> (i32, i32) {
    %c0_i32 = arith.constant 0 : i32
    %c0_i32_0 = arith.constant 0 : i32
    return %arg0, %c0_i32 : i32, i32
  }
  func.func @transform_1(%arg0: i32) -> (i32, i32) {
    %c0_i32 = arith.constant 0 : i32
    %c0_i32_0 = arith.constant 0 : i32
    %c0_i32_1 = arith.constant 0 : i32
    return %c0_i32, %c0_i32_0 : i32, i32
  }
  func.func @transform_2(%arg0: i32) -> (i32, i32) {
    %c0_i32 = arith.constant 0 : i32
    %c0_i32_0 = arith.constant 0 : i32
    %c0_i32_1 = arith.constant 0 : i32
    return %c0_i32, %c0_i32_0 : i32, i32
  }
  func.func @transform_3(%arg0: i32) -> (i32, i32) {
    %c0_i32 = arith.constant 0 : i32
    %c0_i32_0 = arith.constant 0 : i32
    return %arg0, %c0_i32 : i32, i32
  }
}

</mosaic_0001>

<bundles_post_ra>
// kernel: _matmul_call.1
= control target key start
LH: loop header
LB: loop body
LE: loop exit
PB: predicated region body
PF: predicated region fallthrough
CT: control target
= control target key end

     0   :  { %vm30_vm0 = vcmask 392192   ;;  %s237_s0 = inlined_call_operand.vmem [shape: f32[16,48], index: 0, kind: input, shape index: {}]   ;;  %s238_s1 = inlined_call_operand.vmem [shape: f32[48,32], index: 1, kind: input, shape index: {}]   ;;  %s239_s2 = inlined_call_operand.vmem [shape: f32[1,32], index: 2, kind: input, shape index: {}]   ;;  %s240_s3 = inlined_call_operand.hbm [shape: f32[16,32], index: 3, kind: output, shape index: {}]  }
   0x1   :  { %v22_v0 = vld [vmem:[%s238_s1 + $0x28] sm:$0xff]  ;;  %v21_v1 = vld [vmem:[%s238_s1 + $0x20] sm:$0xff]  ;;  %v20_v2 = vld [vmem:[%s238_s1 + $0x18] sm:$0xff] }
   0x2   :  { %142 = vmatprep.subr.mxu0 %v22_v0  ;;  %v15_v3 = vld [vmem:[%s237_s0] sm:$0xff] }
   0x3   :  { %143 = vmatpush3.msra.mxu0 %v22_v0 }
   0x4   :  { %8 = vsyncpa [#allocation3], 0  ;;  %144 = vmatprep.subr.mxu0 %v21_v1  ;;  %154 = vmatprep.mubr.msk.f32.mxu0 %vm30_vm0, %v15_v3  ;;  %v19_v4 = vld [vmem:[%s238_s1 + $0x10] sm:$0xff]  ;;  %v18_v5 = vld [vmem:[%s238_s1 + $0x8] sm:$0xff]  ;;  %s182_s30 = smov [#allocation2]   ;;  %vm112_vm1 = vcmask 261120  }
   0x5   :  { %145 = vmatpush3.msra.mxu0 %v21_v1  ;;  %v17_v6 = vld [vmem:[%s238_s1] sm:$0xff]  ;;  %v16_v7 = vld [vmem:[%s237_s0 + $0x8] sm:$0xff]  ;;  %s120_s4 = sshll.u32 %s182_s30, 4  ;;  %s121_s4 = int_to_ptr.vmem [resolvable:$true] %s120_s4 }
   0x6   :  { %146 = vmatprep.subr.mxu0 %v20_v2  ;;  %v131_v8 = vld [vmem:[%s239_s2] ss:$0 sm:$0xff]  ;;  %s160_s1 = scalar_lea.vmem %s121_s4, 256  ;;  %p165_p1 = scmp.lt.s32.totalorder %s121_s4, %s121_s4 }
   0x7   :  { %147 = vmatpush3.msra.mxu0 %v20_v2  ;;  %p161_p0 = scmp.ne.s32.totalorder %s121_s4, %s160_s1  ;;  %p166_p2 = scmp.lt.s32.totalorder %s160_s1, %s160_s1 }
   0x8   :  { %148 = vmatprep.subr.mxu0 %v19_v4 }
   0x9   :  { %149 = vmatpush3.msra.mxu0 %v19_v4  ;;  %p167_p3 = por %p166_p2, %p165_p1 }
   0xa   :  { %150 = vmatprep.subr.mxu0 %v18_v5 }
   0xb   :  { %151 = vmatpush3.msra.mxu0 %v18_v5  ;;  %p168_p4 = pnand %p167_p3, %p161_p0 }
   0xc   :  { %152 = vmatprep.subr.mxu0 %v17_v6 }
   0xd   :  { %153 = vmatpush3.msra.mxu0 %v17_v6 }
   0xe   :  { %155 = vmatmul.mubr.msk.f32.vlgmr.msra.gmra.mxu0 %vm30_vm0, %v16_v7 }
  0xce   :  { %v156_v9 = vpop.f32.mrf.mxu0 }
  0xcf   :  { %v109_v10 = vadd.f32 %v156_v9, %v131_v8 }
  0xd0   :  { %v103_v11 = vpop.f32.mrf.mxu0 }
  0xd1   :  { %114 = vst.msk [vmem:[#allocation2 + $0x8] sm:$0xff] %vm112_vm1, %v109_v10  ;;  %v104_v12 = vadd.f32 %v131_v8, %v103_v11 }
  0xd3   :  { %113 = vst.msk [vmem:[#allocation2] sm:$0xff] %vm112_vm1, %v104_v12 }
  0xd4   :  { %171 = shalt.err (!%p168_p4)
}
  0xd5   :  { %s183_s0 = smov 128   ;;  %s184_s5 = smov 8  }
  0xd6   :  { %126 = dma.vmem_to_hbm [thread:$0]  %s121_s4, 256, %s240_s3, [#allocation3], %s183_s0, %s183_s0, %s184_s5  }
  0xd7   :  { %180 = dma.done.wait [#allocation3], 256  }
  0xd8   :  { %181 = vsyncadd [#allocation3], 4294967040 }
  0xd9   :  { %130 = vsyncpa [#allocation3], 1 }

</bundles_post_ra>
